<compile_context>
chip_gen: v7x
topology: tpu7x:2x2x1
jax: 0.10.0
libtpu: 0.0.40
codegen_flags: <defaults>
</compile_context>

<pallas_src>
import jax
import jax.numpy as jnp
from jax.experimental import pallas as pl
from jax.experimental.pallas import tpu as pltpu

K = 11                    # self.K in the PyTorch module
_LANE = 128               # lane width; batch tile must be a multiple of this
_MAX_BLOCK_COLS = 8192    # lists per grid step (~3-4 MiB VMEM incl. temps)


# ----------------------------------------------------------------------------
# Pallas kernel: batched ListNet / Plackett-Luce negative log-likelihood.
# ----------------------------------------------------------------------------
def _listnet_loss_kernel(y_ref, out_ref):
    # y_ref  : (K, tb) float32 in VMEM -- one score list per lane column.
    # out_ref: (1, tb) float32 in VMEM -- per-list PL NLL, lane-dense.
    x = y_ref[...]                                        # (K, tb)

    # Shift-invariance of the PL loss: subtract the per-list max (stability).
    m = jnp.max(x, axis=0, keepdims=True)                 # (1, tb)
    xs = x - m
    e = jnp.exp(xs)                                       # (K, tb)

    # Suffix sums over the list axis: downer[t, b] = sum_{l >= t} e[l, b].
    # suffix_mask[t, l] = 1 if l >= t; done as a tiny matmul on the idle MXU.
    t_idx = jax.lax.broadcasted_iota(jnp.int32, (K, K), 0)
    l_idx = jax.lax.broadcasted_iota(jnp.int32, (K, K), 1)
    suffix_mask = (l_idx >= t_idx).astype(jnp.float32)    # (K_t, K_l)
    downer = jnp.dot(suffix_mask, e,
                     preferred_element_type=jnp.float32,
                     precision=jax.lax.Precision.HIGHEST)  # (K, tb)

    # -log P = sum_t [ log(downer[t]) - xs[t] ]   (the K*m shift terms cancel)
    out_ref[...] = jnp.sum(jnp.log(downer) - xs, axis=0, keepdims=True)


def _round_up(n, m):
    return ((n + m - 1) // m) * m


def listnet_loss_batched(y):
    """Plackett-Luce NLL for a batch of score lists.

    y: (B, K) float32  ->  (B,) float32 losses, one pallas_call for the batch.
    """
    y = jnp.asarray(y, jnp.float32)
    assert y.ndim == 2 and y.shape[1] == K, y.shape
    b = y.shape[0]

    # Batch tile (lane axis): multiple of 128, sized so large batches keep a
    # grid length >= 2 (both v7x TensorCores get work), capped for VMEM.
    tb = min(_MAX_BLOCK_COLS,
             max(_LANE, _round_up(pl.cdiv(max(b, 1), 2), _LANE)))
    b_pad = _round_up(max(b, 1), tb)

    # Lane-major layout: lists on lanes, the K scores of each list on sublanes.
    yt = y.T                                               # (K, B)
    if b_pad != b:
        yt = jnp.pad(yt, ((0, 0), (0, b_pad - b)))         # padded cols = junk

    out = pl.pallas_call(
        _listnet_loss_kernel,
        out_shape=jax.ShapeDtypeStruct((1, b_pad), jnp.float32),
        grid=(b_pad // tb,),
        in_specs=[pl.BlockSpec((K, tb), lambda i: (0, i))],
        out_specs=pl.BlockSpec((1, tb), lambda i: (0, i)),
        compiler_params=pltpu.CompilerParams(
            dimension_semantics=("parallel",),      # shard grid across v7x TCs
            vmem_limit_bytes=32 * 1024 * 1024),
    )(yt)
    return out[0, :b]


def listnet_forward(y_head):
    """Exact equivalent of listNet.forward(y_head); y_head has shape (K, 1)."""
    y_head = jnp.asarray(y_head, jnp.float32)
    assert y_head.shape == (K, 1), y_head.shape
    return listnet_loss_batched(y_head.reshape(1, K))[0]


# ----------------------------------------------------------------------------
# Pure-JAX references of the PyTorch forward(), for correctness checking.
# ----------------------------------------------------------------------------
def _listnet_forward_ref(y_head):
    """Literal translation of listNet.P / forward for one (K, 1) list."""
    fw = y_head.astype(jnp.float32)[:, 0]                 # (K,)
    p_log = 0.0
    for t in range(K):
        p_log = p_log + (fw[t] - jnp.log(jnp.sum(jnp.exp(fw[t:]))))
    return -p_log


def _listnet_loss_ref_batched(y):
    """Vectorized reference for a (B, K) batch."""
    y = y.astype(jnp.float32)
    e = jnp.exp(y)
    downer = jnp.flip(jnp.cumsum(jnp.flip(e, axis=1), axis=1), axis=1)
    return jnp.sum(jnp.log(downer) - y, axis=1)


if __name__ == "__main__":
    key = jax.random.PRNGKey(0)
    k1, k2 = jax.random.split(key)

    # --- exact module semantics: one (K, 1) score list -> scalar loss -------
    y_head = jax.random.normal(k1, (K, 1), dtype=jnp.float32)
    loss1 = listnet_forward(y_head)
    jax.block_until_ready(loss1)
    ref1 = _listnet_forward_ref(y_head)
    assert jnp.allclose(loss1, ref1, rtol=1e-5, atol=1e-4), (loss1, ref1)

    # --- batched path: many independent lists in ONE pallas_call ------------
    B = 64
    y_batch = 2.0 * jax.random.normal(k2, (B, K), dtype=jnp.float32)
    losses = listnet_loss_batched(y_batch)
    jax.block_until_ready(losses)
    ref_b = _listnet_loss_ref_batched(y_batch)
    assert losses.shape == (B,)
    assert jnp.allclose(losses, ref_b, rtol=1e-5, atol=1e-4), (losses, ref_b)

    # --- numerical stability: large scores no longer overflow ---------------
    loss_big = listnet_forward(y_head + 300.0)
    jax.block_until_ready(loss_big)
    assert bool(jnp.isfinite(loss_big))

    print("KERNEL_OK")
</pallas_src>

<mosaic_0001>
module attributes {stable_mosaic.version = 11 : i64} {
  func.func @_listnet_loss_kernel(%arg0: i32, %arg1: memref<11x128xf32, #tpu.memory_space<vmem>>, %arg2: memref<1x128xf32, #tpu.memory_space<vmem>>) attributes {dimension_semantics = [#tpu.dimension_semantics<parallel>], iteration_bounds = array<i64: 1>, scalar_prefetch = 0 : i64, scratch_operands = 0 : i64, tpu.core_type = #tpu.core_type<tc>, window_params = [{transform_indices = @transform_0, window_bounds = array<i64: 11, 128>}, {transform_indices = @transform_1, window_bounds = array<i64: 1, 128>}]} {
    %c0 = arith.constant 0 : index
    %c0_0 = arith.constant 0 : index
    %0 = vector.load %arg1[%c0, %c0_0] : memref<11x128xf32, #tpu.memory_space<vmem>>, vector<11x128xf32>
    %cst = arith.constant dense<0xFF800000> : vector<128xf32>
    %1 = vector.multi_reduction <maximumf>, %0, %cst [0] : vector<11x128xf32> to vector<128xf32>
    %2 = vector.shape_cast %1 : vector<128xf32> to vector<1x128xf32>
    %3 = vector.broadcast %2 : vector<1x128xf32> to vector<11x128xf32>
    %4 = arith.subf %0, %3 : vector<11x128xf32>
    %5 = math.exp %4 : vector<11x128xf32>
    %6 = tpu.iota {dimensions = array<i32: 0>} : vector<11x11xi32>
    %7 = tpu.iota {dimensions = array<i32: 1>} : vector<11x11xi32>
    %8 = arith.cmpi sge, %7, %6 : vector<11x11xi32>
    %9 = arith.extui %8 : vector<11x11xi1> to vector<11x11xi32>
    %10 = arith.sitofp %9 : vector<11x11xi32> to vector<11x11xf32>
    %cst_1 = arith.constant dense<0.000000e+00> : vector<11x128xf32>
    %11 = tpu.matmul %10, %5, %cst_1 {dimension_numbers = #tpu.dot_dimension_numbers<[1], [0], [0], [1], [0, 0, 1, 1], [], []>, precision = #tpu.contract_precision<fp32>} : vector<11x11xf32>, vector<11x128xf32>, vector<11x128xf32> -> vector<11x128xf32>
    %12 = math.log %11 : vector<11x128xf32>
    %13 = arith.subf %12, %4 : vector<11x128xf32>
    %cst_2 = arith.constant dense<0.000000e+00> : vector<128xf32>
    %14 = vector.multi_reduction <add>, %13, %cst_2 [0] : vector<11x128xf32> to vector<128xf32>
    %15 = vector.shape_cast %14 : vector<128xf32> to vector<1x128xf32>
    %c0_3 = arith.constant 0 : index
    %c0_4 = arith.constant 0 : index
    %16 = vector.load %arg2[%c0_3, %c0_4] : memref<1x128xf32, #tpu.memory_space<vmem>>, vector<1x128xf32>
    tpu.vector_store %arg2[%c0_3, %c0_4], %15 {strides = array<i32>} : memref<1x128xf32, #tpu.memory_space<vmem>>, vector<1x128xf32>,
    return
  }
  func.func @transform_0(%arg0: i32) -> (i32, i32) {
    %c0_i32 = arith.constant 0 : i32
    %c0_i32_0 = arith.constant 0 : i32
    return %c0_i32, %arg0 : i32, i32
  }
  func.func @transform_1(%arg0: i32) -> (i32, i32) {
    %c0_i32 = arith.constant 0 : i32
    %c0_i32_0 = arith.constant 0 : i32
    return %c0_i32, %arg0 : i32, i32
  }
}

</mosaic_0001>

<bundles_post_ra>
// kernel: tpu_custom_call.1
= control target key start
LH: loop header
LB: loop body
LE: loop exit
PB: predicated region body
PF: predicated region fallthrough
CT: control target
= control target key end

     0   :  { %6 = vsyncpa [#allocation3], 0  ;;  %s826_s0 = inlined_call_operand.hbm [shape: f32[11,128], index: 0, kind: input, shape index: {}]   ;;  %s827_s1 = inlined_call_operand.hbm [shape: f32[1,128], index: 1, kind: output, shape index: {}]  }
   0x1   :  { %7 = vsyncpa [#allocation4], 0  ;;  %s762_s6 = smov [#allocation2]   ;;  %s714_s10 = scalar_lea.hbm %s826_s0, 256 }
   0x2   :  { %s13_s7 = sshll.u32 %s762_s6, 4  ;;  %p715_p0 = scmp.ne.s32.totalorder %s826_s0, %s714_s10  ;;  %s14_s7 = int_to_ptr.vmem [resolvable:$true] %s13_s7 }
   0x3   :  { %p718_p1 = scmp.lt.u32.totalorder %s714_s10, %s826_s0 }
   0x5   :  { %p720_p2 = pnand %p718_p1, %p715_p0 }
   0x7   :  { %723 = shalt.err (!%p720_p2)
}
   0x8   :  { %s724_s15 = scalar_lea.vmem %s14_s7, 256  ;;  %p729_p4 = scmp.lt.s32.totalorder %s14_s7, %s14_s7 }
   0x9   :  { %p725_p3 = scmp.ne.s32.totalorder %s14_s7, %s724_s15  ;;  %p730_p5 = scmp.lt.s32.totalorder %s724_s15, %s724_s15 }
   0xb   :  { %p731_p6 = por %p730_p5, %p729_p4 }
   0xd   :  { %p732_p7 = pnand %p731_p6, %p725_p3 }
   0xf   :  { %735 = shalt.err (!%p732_p7)
}
  0x10   :  { %s763_s16 = smov 128   ;;  %s764_s17 = smov 8  }
  0x11   :  { %19 = dma.hbm_to_vmem [thread:$0]  %s826_s0, 256, %s14_s7, [#allocation3], %s763_s16, %s763_s16, %s764_s17  }
  0x12   :  { %758 = dma.done.wait [#allocation3], 256  }
  0x13   :  { %759 = vsyncadd [#allocation3], 4294967040  ;;  %v40_v0 = vlaneseq  ;;  %vm51_vm0 = vcmask 89088   ;;  %vm25_vm2 = vcmask 1042432   ;;  %v765_v3 = vmov 0.0   ;;  %v23_v6 = vld [vmem:[#allocation2] sm:$0xff] }
  0x14   :  { %v24_v7 = vld [vmem:[#allocation2 + $0x8] sm:$0x7]  ;;  %s766_s0 = smov [#allocation5]  }
  0x15   :  { %v41_v1 = vshrl.u32 %v40_v0, 7  ;;  %v44_v2 = vand.u32 127, %v40_v0  ;;  %v26_v9 = vsel %vm25_vm2, %v24_v7, -inf  ;;  %s584_s20 = sshll.u32 %s766_s0, 4  ;;  %s585_s20 = int_to_ptr.vmem [resolvable:$true] %s584_s20 }
  0x16   :  { %v27_v10 = vmax.f32 %v23_v6, %v26_v9  ;;  %s736_s21 = scalar_lea.vmem %s585_s20, 16  ;;  %s740_s22 = scalar_lea.vmem %s585_s20, 32 }
  0x17   :  { %vm45_vm1 = vcmp.ge.s32.totalorder %v44_v2, %v41_v1  ;;  %v42_v19 = vadd.s32 8, %v41_v1  ;;  %p737_p8 = scmp.ne.s32.totalorder %s585_s20, %s736_s21  ;;  %p741_p9 = scmp.lt.s32.totalorder %s585_s20, %s585_s20 }
  0x18   :  { %v789_v4 = vsel %vm45_vm1, 1.0, %v765_v3  ;;  %v28_v12 = vrot.slane %v27_v10, 4  ;;  %p742_p10 = scmp.lt.s32.totalorder %s740_s22, %s736_s21 }
  0x19   :  { %v53_v5 = vsel %vm51_vm0, %v789_v4, 0  ;;  %vm46_vm3 = vcmp.ge.s32.totalorder %v44_v2, %v42_v19 }
  0x1a   :  { %v129_v8 = vsub.f32 %v53_v5, %v53_v5  ;;  %v29_v14 = vmax.f32 %v27_v10, %v28_v12  ;;  %v594_v25 = vsel %vm46_vm3, 1.0, %v765_v3  ;;  %p743_p11 = por %p742_p10, %p741_p9 }
  0x1b   :  { %v56_v26 = vsel %vm51_vm0, %v594_v25, 0 }
  0x1c   :  { %v130_v11 = vand.u32 4294901760, %v129_v8  ;;  %v30_v16 = vrot.slane %v29_v14, 2  ;;  %v139_v27 = vsub.f32 %v56_v26, %v56_v26  ;;  %p744_p12 = pnand %p743_p11, %p737_p8 }
  0x1e   :  { %v131_v13 = vsub.f32 %v129_v8, %v130_v11  ;;  %650 = vmatprep.mubr.f32.mxu0 %v130_v11  ;;  %v31_v17 = vmax.f32 %v29_v14, %v30_v16  ;;  %v140_v28 = vand.u32 4294901760, %v139_v27 }
  0x20   :  { %v132_v15 = vand.u32 4294901760, %v131_v13  ;;  %v32_v18 = vrot.slane %v31_v17, 1  ;;  %v141_v34 = vsub.f32 %v139_v27, %v140_v28 }
  0x22   :  { %629 = vmatprep.mubr.f32.mxu1 %v132_v15  ;;  %v33_v20 = vmax.f32 %v31_v17, %v32_v18  ;;  %v142_v39 = vand.u32 4294901760, %v141_v34 }
  0x24   :  { %v794_v21 = vsub.f32 %v23_v6, %v33_v20  ;;  %v796_v22 = vsub.f32 %v24_v7, %v33_v20 }
  0x26   :  { %v36_v23 = vmul.f32 1.442695, %v794_v21  ;;  %v38_v24 = vmul.f32 1.442695, %v796_v22 }
  0x28   :  { %706 = vpow2.f32 %v36_v23 }
  0x29   :  { %708 = vpow2.f32 %v38_v24 }
  0x32   :  { %v707_v29 = vpop.eup %706 }
  0x33   :  { %v709_v30 = vpop.eup %708  ;;  %v62_v31 = vand.u32 4294901760, %v707_v29 }
  0x34   :  { %v59_v32 = vsel %vm25_vm2, %v709_v30, 0 }
  0x35   :  { %v65_v33 = vand.u32 4294901760, %v59_v32  ;;  %v150_v35 = vsub.f32 %v707_v29, %v62_v31 }
  0x37   :  { %v667_v36 = vpack.c.bf16 %v65_v33, %v62_v31  ;;  %v151_v37 = vand.u32 4294901760, %v150_v35  ;;  %v157_v38 = vsub.f32 %v59_v32, %v65_v33 }
  0x39   :  { %668 = vmatprep.subr.bf16.mxu1 %v667_v36  ;;  %680 = vmatprep.subr.bf16.mxu0 %v667_v36  ;;  %v152_v40 = vsub.f32 %v150_v35, %v151_v37  ;;  %v158_v41 = vand.u32 4294901760, %v157_v38  ;;  %v675_v47 = vpack.c.bf16 %v157_v38, %v150_v35 }
  0x3a   :  { %670 = vmatpush3.bf16.msra.mxu1 %v667_v36  ;;  %682 = vmatpush3.bf16.msra.mxu0 %v667_v36 }
  0x3b   :  { %v153_v42 = vand.u32 4294901760, %v152_v40  ;;  %v159_v43 = vsub.f32 %v157_v38, %v158_v41  ;;  %v683_v44 = vpack.c.bf16 %v158_v41, %v151_v37 }
  0x3d   :  { %630 = vmatmul.mubr.f32.vlgmr.msra.gmra.mrb[0].mxu1 %v142_v39  ;;  %651 = vmatmul.mubr.f32.vlgmr.msra.gmra.mrb[0].mxu0 %v140_v28  ;;  %v160_v45 = vand.u32 4294901760, %v159_v43 }
  0x3e   :  { %684 = vmatprep.subr.bf16.mxu0 %v683_v44  ;;  %636 = vmatprep.mubr.msk.f32.mxu1 %vm51_vm0, %v789_v4 }
  0x3f   :  { %v671_v46 = vpack.c.bf16 %v160_v45, %v153_v42  ;;  %686 = vmatpush3.bf16.msra.mxu0 %v683_v44  ;;  %657 = vmatprep.mubr.msk.f32.mxu0 %vm51_vm0, %v789_v4 }
  0x40   :  { %688 = vmatprep.subr.bf16.mxu0 %v667_v36 }
  0x41   :  { %672 = vmatprep.subr.bf16.mxu1 %v671_v46 }
  0x42   :  { %674 = vmatpush3.bf16.msra.mxu1 %v671_v46 }
  0x43   :  { %676 = vmatprep.subr.bf16.mxu1 %v675_v47 }
  0x45   :  { %637 = vmatmul.mubr.msk.f32.vlgmr.msra.gmra.mrb[0].mxu1 %vm51_vm0, %v594_v25  ;;  %658 = vmatmul.mubr.msk.f32.vlgmr.msra.gmra.mrb[0].mxu0 %vm51_vm0, %v594_v25 }
  0x46   :  { %678 = vmatpush3.bf16.msra.mxu1 %v675_v47  ;;  %690 = vmatpush3.bf16.msra.mxu0 %v667_v36 }
  0x47   :  { %643 = vmatprep.mubr.f32.mxu1 %v129_v8  ;;  %664 = vmatprep.mubr.msk.f32.mxu0 %vm51_vm0, %v789_v4 }
  0x4d   :  { %644 = vmatmul.mubr.f32.vlgmr.msra.gmra.mrb[0].mxu1 %v139_v27  ;;  %665 = vmatmul.mubr.msk.f32.vlgmr.msra.gmra.mrb[0].mxu0 %vm51_vm0, %v594_v25 }
 0x120   :  { %v645_v48 = vpop.f32.mrb[0].mxu1  ;;  %v666_v49 = vpop.f32.mrb[0].mxu0 }
 0x121   :  { %v691_v50 = vadd.f32 %v666_v49, %v645_v48  ;;  %v307_v51 = vpop.f32.mrb[1].mxu1  ;;  %v553_v52 = vpop.f32.mrb[1].mxu0 }
 0x122   :  { %v692_v53 = vadd.f32 %v553_v52, %v307_v51 }
 0x123   :  { %710 = vlog2.f32 %v691_v50 }
 0x124   :  { %712 = vlog2.f32 %v692_v53 }
 0x12d   :  { %v711_v54 = vpop.eup %710 }
 0x12e   :  { %v713_v55 = vpop.eup %712  ;;  %v566_v56 = vmul.f32 0.6931472, %v711_v54 }
 0x12f   :  { %v564_v57 = vmul.f32 0.6931472, %v713_v55 }
 0x130   :  { %v568_v58 = vsub.f32 %v566_v56, %v796_v22 }
 0x131   :  { %v567_v59 = vsub.f32 %v564_v57, %v794_v21 }
 0x132   :  { %v569_v60 = vsel %vm25_vm2, %v568_v58, 0.0 }
 0x133   :  { %v570_v61 = vadd.f32 %v569_v60, %v567_v59 }
 0x135   :  { %v571_v62 = vrot.slane %v570_v61, 4 }
 0x137   :  { %v572_v63 = vadd.f32 %v571_v62, %v570_v61 }
 0x139   :  { %v573_v0 = vrot.slane %v572_v63, 2 }
 0x13b   :  { %v574_v1 = vadd.f32 %v573_v0, %v572_v63 }
 0x13d   :  { %v575_v2 = vrot.slane %v574_v1, 1 }
 0x13f   :  { %v576_v3 = vadd.f32 %v575_v2, %v574_v1 }
 0x141   :  { %577 = vst [vmem:[#allocation5] sm:$0x1] %v576_v3 }
 0x142   :  { %747 = shalt.err (!%p744_p12)
}
 0x143   :  { %s748_s25 = scalar_lea.hbm %s827_s1, 16 }
 0x144   :  { %p749_p13 = scmp.ne.s32.totalorder %s827_s1, %s748_s25  ;;  %p752_p0 = scmp.lt.u32.totalorder %s748_s25, %s827_s1 }
 0x146   :  { %p754_p1 = pnand %p752_p0, %p749_p13 }
 0x148   :  { %757 = shalt.err (!%p754_p1)
}
 0x149   :  { %587 = dma.vmem_to_hbm [thread:$0]  %s585_s20, 16, %s827_s1, [#allocation4]  }
 0x14a   :  { %760 = dma.done.wait [#allocation4], 16  }
 0x14b   :  { %761 = vsyncadd [#allocation4], 4294967280 }
 0x14c   :  { %591 = vsyncpa [#allocation3], 1 }
 0x14d   :  { %592 = vsyncpa [#allocation4], 1 }

</bundles_post_ra>
